<compile_context>
chip_gen: v5e
topology: v5e:2x2
jax: 0.10.0
libtpu: 0.0.40
codegen_flags: <defaults>
</compile_context>

<pallas_src>
import jax
import jax.numpy as jnp
from jax import lax
from jax.experimental import pallas as pl
from jax.experimental.pallas import tpu as pltpu

NEG_SLOPE = 0.2      # GraphLayer negative_slope
BN_EPS = 1e-5        # nn.BatchNorm1d default eps
MASK_VAL = -1e30     # non-edge sentinel
M_INIT = -1e9        # running-max init; MASK_VAL - M_INIT << -100 so exp() underflows to 0


def _round_up(v, m):
    return (v + m - 1) // m * m


def _pad2(a, rows, cols):
    return jnp.pad(a, ((0, rows - a.shape[0]), (0, cols - a.shape[1])))


def _vmem_limit_bytes():
    """Generation-aware scoped-VMEM limit (~3/4 of physical VMEM, capped at 100 MiB)."""
    try:
        cap = pltpu.get_tpu_info().vmem_capacity_bytes
    except Exception:
        cap = 64 * 1024 * 1024          # conservative fallback (v7x-sized VMEM)
    return int(min(cap * 3 // 4, 100 * 1024 * 1024))


# --------------------------------------------------------------------------------------
# Pass 1: xw = x @ W (bf16 MXU, f32 accumulate) + per-node attention terms a, b
#         a[i] = <xw[i], att_i> + <emb[i], att_em_i>   (target term)
#         b[j] = <xw[j], att_j> + <emb[j], att_em_j>   (source term)
# --------------------------------------------------------------------------------------
def project_kernel(x_ref, w_ref, emb_ref, att_i_ref, att_em_i_ref,
                   att_j_ref, att_em_j_ref, xw_ref, a_ref, b_ref):
    xw = jnp.dot(x_ref[...].astype(jnp.bfloat16), w_ref[...],
                 preferred_element_type=jnp.float32)                 # [TM, Cp] f32 (MXU)
    emb = emb_ref[...]
    # thin attention dots: VPU multiply + lane reduce (keeps the MXU free)
    a = (jnp.sum(xw * att_i_ref[...], axis=1, keepdims=True)
         + jnp.sum(emb * att_em_i_ref[...], axis=1, keepdims=True))  # [TM, 1]
    b = (jnp.sum(xw * att_j_ref[...], axis=1, keepdims=True)
         + jnp.sum(emb * att_em_j_ref[...], axis=1, keepdims=True))  # [TM, 1]
    xw_ref[...] = xw.astype(jnp.bfloat16)
    a_ref[...] = a
    b_ref[...] = b


# --------------------------------------------------------------------------------------
# Pass 2: online (flash-style) masked softmax over source blocks + aggregation.
#         grid = (target row tiles, source tiles); scratch holds running max/denom/acc.
#         Emits bf16 pre-BN output and per-row-tile BatchNorm partial sums (f32).
# --------------------------------------------------------------------------------------
def attend_aggregate_kernel(adj_ref, a_ref, b_ref, xw_ref, bias_ref, rmask_ref,
                            out_ref, psum_ref, psumsq_ref, m_sc, l_sc, acc_sc):
    j = pl.program_id(1)

    @pl.when(j == 0)
    def _():
        m_sc[...] = jnp.full_like(m_sc, M_INIT)
        l_sc[...] = jnp.zeros_like(l_sc)
        acc_sc[...] = jnp.zeros_like(acc_sc)

    # scores for this [TM targets x TK sources] tile
    mask = adj_ref[...] != 0                                   # int8 compare, no f32 cast
    alpha = a_ref[...] + b_ref[...]                            # [TM, TK]
    alpha = jnp.maximum(alpha, NEG_SLOPE * alpha)              # leaky_relu (slope < 1)
    masked = jnp.where(mask, alpha, MASK_VAL)

    # online softmax update
    m_prev = m_sc[...]
    m_new = jnp.maximum(m_prev, jnp.max(masked, axis=1, keepdims=True))
    corr = jnp.exp(m_prev - m_new)
    e = jnp.exp(masked - m_new)            # masked entries: exp(~ -1e30) underflows to 0
    l_sc[...] = corr * l_sc[...] + jnp.sum(e, axis=1, keepdims=True)
    acc_sc[...] = corr * acc_sc[...] + jnp.dot(
        e.astype(jnp.bfloat16), xw_ref[...], preferred_element_type=jnp.float32)
    m_sc[...] = m_new

    @pl.when(j == pl.num_programs(1) - 1)
    def _():
        # exact per-row normalisation (cheap: [TM, Cp] / [TM, 1]) + GraphLayer bias
        out = acc_sc[...] / l_sc[...] + bias_ref[...]          # [TM, Cp] f32
        out_ref[...] = out.astype(out_ref.dtype)               # bf16 stream to HBM
        m_out = out * rmask_ref[...]                           # drop padded target rows
        psum_ref[...] = jnp.sum(m_out, axis=0, keepdims=True)[None]       # [1,1,Cp]
        psumsq_ref[...] = jnp.sum(m_out * out, axis=0, keepdims=True)[None]


# --------------------------------------------------------------------------------------
# Pass 3: BatchNorm affine + ReLU, tiled over rows (reads bf16, writes f32).
# --------------------------------------------------------------------------------------
def bn_relu_kernel(out_ref, scale_ref, shift_ref, y_ref):
    y_ref[...] = jnp.maximum(
        out_ref[...].astype(jnp.float32) * scale_ref[...] + shift_ref[...], 0.0)


def gnn_layer_forward(x, edge_index, embedding, params, *, tm=256, tk=512):
    """x: [N, Cin] f32, edge_index: [2, E] i32, embedding: [N, Cout] f32."""
    n, cin = x.shape
    cout = params["w"].shape[1]

    # ---- tile sizes / padded shapes -----------------------------------------------------
    cin_p = _round_up(cin, 128)
    cout_p = _round_up(cout, 128)

    tk = max(128, min(tk, _round_up(n, 128)) // 128 * 128)     # adj lanes / xw sublanes
    n_pad = _round_up(n, tk)
    tm = max(32, min(tm, n_pad) // 32 * 32)                    # int8 adj sublanes: 32-mult
    while n_pad % tm:
        tm -= 32
    nt = n_pad // tm
    if nt > 1 and nt % 2 and tm % 64 == 0:                     # balance v7x's 2 TensorCores
        tm //= 2
        nt = n_pad // tm
    ns = n_pad // tk

    # ---- glue: pad to lane/sublane-friendly shapes --------------------------------------
    x_p = _pad2(x, n_pad, cin_p)
    emb_p = _pad2(embedding, n_pad, cout_p)
    w_p = _pad2(params["w"], cin_p, cout_p).astype(jnp.bfloat16)
    att_i = _pad2(params["att_i"], 1, cout_p)
    att_j = _pad2(params["att_j"], 1, cout_p)
    att_em_i = _pad2(params["att_em_i"], 1, cout_p)
    att_em_j = _pad2(params["att_em_j"], 1, cout_p)
    bias_p = _pad2(params["bias"], 1, cout_p)
    gamma_p = _pad2(params["gamma"], 1, cout_p)
    beta_p = _pad2(params["beta"], 1, cout_p)

    # glue: edge list -> dense int8 adjacency (built directly in int8; no int32 temp).
    # remove_self_loops + add_self_loops == force the diagonal to 1 (padded rows get a
    # self loop too so their discarded softmax stays finite).
    src_e, dst_e = edge_index[0], edge_index[1]
    diag = jnp.arange(n_pad)
    adj = (jnp.zeros((n_pad, n_pad), jnp.int8)
           .at[dst_e, src_e].set(1)
           .at[diag, diag].set(1))

    rowmask = (jnp.arange(n_pad) < n).astype(jnp.float32).reshape(n_pad, 1)

    vmem_lim = _vmem_limit_bytes()
    cp_1d = pltpu.CompilerParams(dimension_semantics=("parallel",),
                                 vmem_limit_bytes=vmem_lim)
    cp_2d = pltpu.CompilerParams(dimension_semantics=("parallel", "arbitrary"),
                                 vmem_limit_bytes=vmem_lim)

    # ---- pass 1 --------------------------------------------------------------------------
    xw, a_col, b_col = pl.pallas_call(
        project_kernel,
        out_shape=(jax.ShapeDtypeStruct((n_pad, cout_p), jnp.bfloat16),
                   jax.ShapeDtypeStruct((n_pad, 1), jnp.float32),
                   jax.ShapeDtypeStruct((n_pad, 1), jnp.float32)),
        grid=(nt,),
        in_specs=[pl.BlockSpec((tm, cin_p), lambda i: (i, 0)),
                  pl.BlockSpec((cin_p, cout_p), lambda i: (0, 0)),   # constant across grid
                  pl.BlockSpec((tm, cout_p), lambda i: (i, 0)),
                  pl.BlockSpec((1, cout_p), lambda i: (0, 0)),
                  pl.BlockSpec((1, cout_p), lambda i: (0, 0)),
                  pl.BlockSpec((1, cout_p), lambda i: (0, 0)),
                  pl.BlockSpec((1, cout_p), lambda i: (0, 0))],
        out_specs=(pl.BlockSpec((tm, cout_p), lambda i: (i, 0)),
                   pl.BlockSpec((tm, 1), lambda i: (i, 0)),
                   pl.BlockSpec((tm, 1), lambda i: (i, 0))),
        compiler_params=cp_1d,
    )(x_p, w_p, emb_p, att_i, att_em_i, att_j, att_em_j)

    b_row = b_col.reshape(1, n_pad)

    # ---- pass 2 (online softmax over source tiles) ----------------------------------------
    out_pre, psum, psumsq = pl.pallas_call(
        attend_aggregate_kernel,
        out_shape=(jax.ShapeDtypeStruct((n_pad, cout_p), jnp.bfloat16),
                   jax.ShapeDtypeStruct((nt, 1, cout_p), jnp.float32),
                   jax.ShapeDtypeStruct((nt, 1, cout_p), jnp.float32)),
        grid=(nt, ns),
        in_specs=[pl.BlockSpec((tm, tk), lambda i, j: (i, j)),       # adj tile (int8)
                  pl.BlockSpec((tm, 1), lambda i, j: (i, 0)),        # a (target term)
                  pl.BlockSpec((1, tk), lambda i, j: (0, j)),        # b (source term)
                  pl.BlockSpec((tk, cout_p), lambda i, j: (j, 0)),   # xw source rows (bf16)
                  pl.BlockSpec((1, cout_p), lambda i, j: (0, 0)),    # bias
                  pl.BlockSpec((tm, 1), lambda i, j: (i, 0))],       # valid-target-row mask
        out_specs=(pl.BlockSpec((tm, cout_p), lambda i, j: (i, 0)),
                   pl.BlockSpec((1, 1, cout_p), lambda i, j: (i, 0, 0)),
                   pl.BlockSpec((1, 1, cout_p), lambda i, j: (i, 0, 0))),
        scratch_shapes=[pltpu.VMEM((tm, 1), jnp.float32),            # running max
                        pltpu.VMEM((tm, 1), jnp.float32),            # running denom
                        pltpu.VMEM((tm, cout_p), jnp.float32)],      # f32 accumulator
        compiler_params=cp_2d,
    )(adj, a_col, b_row, xw, bias_p, rowmask)

    # ---- glue: finalize BatchNorm batch statistics (tiny [Cout]-sized reduction) ----------
    s = jnp.sum(psum, axis=(0, 1))
    ssq = jnp.sum(psumsq, axis=(0, 1))
    mean = s / n
    var = jnp.maximum(ssq / n - mean * mean, 0.0)    # biased variance (torch BN training)
    inv = lax.rsqrt(var + BN_EPS)
    scale = (gamma_p[0] * inv).reshape(1, cout_p)
    shift = (beta_p[0] - mean * gamma_p[0] * inv).reshape(1, cout_p)

    # ---- pass 3 ----------------------------------------------------------------------------
    y = pl.pallas_call(
        bn_relu_kernel,
        out_shape=jax.ShapeDtypeStruct((n_pad, cout_p), jnp.float32),
        grid=(nt,),
        in_specs=[pl.BlockSpec((tm, cout_p), lambda i: (i, 0)),
                  pl.BlockSpec((1, cout_p), lambda i: (0, 0)),
                  pl.BlockSpec((1, cout_p), lambda i: (0, 0))],
        out_specs=pl.BlockSpec((tm, cout_p), lambda i: (i, 0)),
        compiler_params=cp_1d,
    )(out_pre, scale, shift)

    return y[:n, :cout]


def gnn_layer_reference(x, edge_index, embedding, params):
    """Pure-JAX reference of the same math (mirrors the kernel's bf16 matmul inputs with
    f32 accumulation so the comparison isolates kernel correctness, not dtype choice)."""
    n = x.shape[0]
    src, dst = edge_index[0], edge_index[1]
    keep = (src != dst).astype(jnp.float32)
    adj = jnp.zeros((n, n), jnp.float32).at[dst, src].max(keep)
    adj = adj.at[jnp.arange(n), jnp.arange(n)].set(1.0)

    xw = jnp.dot(x.astype(jnp.bfloat16), params["w"].astype(jnp.bfloat16),
                 preferred_element_type=jnp.float32)
    a = (jnp.sum(xw * params["att_i"], axis=1, keepdims=True)
         + jnp.sum(embedding * params["att_em_i"], axis=1, keepdims=True))
    b = (jnp.sum(xw * params["att_j"], axis=1, keepdims=True)
         + jnp.sum(embedding * params["att_em_j"], axis=1, keepdims=True))
    alpha = a + b.T
    alpha = jnp.where(alpha > 0, alpha, NEG_SLOPE * alpha)
    alpha = jnp.where(adj > 0, alpha, -jnp.inf)
    alpha = jax.nn.softmax(alpha, axis=1)
    out = jnp.dot(alpha.astype(jnp.bfloat16), xw.astype(jnp.bfloat16),
                  preferred_element_type=jnp.float32) + params["bias"]
    mean = jnp.mean(out, axis=0, keepdims=True)
    var = jnp.mean((out - mean) ** 2, axis=0, keepdims=True)
    y = (out - mean) / jnp.sqrt(var + BN_EPS) * params["gamma"] + params["beta"]
    return jnp.maximum(y, 0.0)


def init_params(key, in_ch, out_ch):
    ks = jax.random.split(key, 8)
    glorot_w = (6.0 / (in_ch + out_ch)) ** 0.5
    glorot_a = (6.0 / (1 + out_ch)) ** 0.5
    return {
        # lin.weight is [out_ch, in_ch] in torch; stored transposed here for x @ W.
        "w": jax.random.uniform(ks[0], (in_ch, out_ch), jnp.float32, -glorot_w, glorot_w),
        "att_i": jax.random.uniform(ks[1], (1, out_ch), jnp.float32, -glorot_a, glorot_a),
        "att_j": jax.random.uniform(ks[2], (1, out_ch), jnp.float32, -glorot_a, glorot_a),
        # att_em_* are zero-init in the module; use small values so the path is exercised.
        "att_em_i": 0.05 * jax.random.normal(ks[3], (1, out_ch), jnp.float32),
        "att_em_j": 0.05 * jax.random.normal(ks[4], (1, out_ch), jnp.float32),
        "bias": 0.1 * jax.random.normal(ks[5], (1, out_ch), jnp.float32),
        "gamma": 1.0 + 0.1 * jax.random.normal(ks[6], (1, out_ch), jnp.float32),
        "beta": 0.1 * jax.random.normal(ks[7], (1, out_ch), jnp.float32),
    }


if __name__ == "__main__":
    # Small demo shapes (embedding dim must equal out_channels, as implied by att_em_*).
    # TM=64 / TK=128 keep a multi-step (4 x 2) grid at N=200 so both the parallel
    # row-tile axis and the online-softmax source-tile axis are exercised; at realistic
    # sizes use the defaults (TM=256, TK=512).
    N, IN_CH, OUT_CH, TM, TK = 200, 48, 32, 64, 128

    key = jax.random.PRNGKey(0)
    k_x, k_e, k_p = jax.random.split(key, 3)
    x = jax.random.normal(k_x, (N, IN_CH), jnp.float32)
    embedding = jax.random.normal(k_e, (N, OUT_CH), jnp.float32)

    # Bidirectional ring graph (no self loops, no duplicates): [2, 2N] edge_index.
    idx = jnp.arange(N, dtype=jnp.int32)
    src = jnp.concatenate([idx, idx])
    dst = jnp.concatenate([(idx + 1) % N, (idx - 1) % N])
    edge_index = jnp.stack([src, dst], axis=0)

    params = init_params(k_p, IN_CH, OUT_CH)

    out = gnn_layer_forward(x, edge_index, embedding, params, tm=TM, tk=TK)
    out = jax.block_until_ready(out)

    ref = gnn_layer_reference(x, edge_index, embedding, params)
    assert out.shape == (N, OUT_CH)
    assert bool(jnp.all(jnp.isfinite(out)))
    max_err = float(jnp.max(jnp.abs(out - ref)))
    # bf16 matmul inputs + bf16 pre-BN intermediate => ~1e-2-level absolute error budget.
    assert bool(jnp.allclose(out, ref, rtol=2e-2, atol=2e-2)), max_err

    print("KERNEL_OK")
</pallas_src>

<mosaic_0001>
module attributes {stable_mosaic.version = 11 : i64} {
  func.func @project_kernel(%arg0: i32, %arg1: memref<64x128xf32, #tpu.memory_space<vmem>>, %arg2: memref<128x128xbf16, #tpu.memory_space<vmem>>, %arg3: memref<64x128xf32, #tpu.memory_space<vmem>>, %arg4: memref<1x128xf32, #tpu.memory_space<vmem>>, %arg5: memref<1x128xf32, #tpu.memory_space<vmem>>, %arg6: memref<1x128xf32, #tpu.memory_space<vmem>>, %arg7: memref<1x128xf32, #tpu.memory_space<vmem>>, %arg8: memref<64x128xbf16, #tpu.memory_space<vmem>>, %arg9: memref<64x1xf32, #tpu.memory_space<vmem>>, %arg10: memref<64x1xf32, #tpu.memory_space<vmem>>) attributes {dimension_semantics = [#tpu.dimension_semantics<parallel>], iteration_bounds = array<i64: 4>, scalar_prefetch = 0 : i64, scratch_operands = 0 : i64, tpu.core_type = #tpu.core_type<tc>, window_params = [{transform_indices = @transform_0, window_bounds = array<i64: 64, 128>}, {pipeline_mode = #tpu.pipeline_mode<synchronous>, transform_indices = @transform_1, window_bounds = array<i64: 128, 128>}, {transform_indices = @transform_2, window_bounds = array<i64: 64, 128>}, {pipeline_mode = #tpu.pipeline_mode<synchronous>, transform_indices = @transform_3, window_bounds = array<i64: 1, 128>}, {pipeline_mode = #tpu.pipeline_mode<synchronous>, transform_indices = @transform_4, window_bounds = array<i64: 1, 128>}, {pipeline_mode = #tpu.pipeline_mode<synchronous>, transform_indices = @transform_5, window_bounds = array<i64: 1, 128>}, {pipeline_mode = #tpu.pipeline_mode<synchronous>, transform_indices = @transform_6, window_bounds = array<i64: 1, 128>}, {transform_indices = @transform_7, window_bounds = array<i64: 64, 128>}, {transform_indices = @transform_8, window_bounds = array<i64: 64, 1>}, {transform_indices = @transform_9, window_bounds = array<i64: 64, 1>}]} {
    %c0 = arith.constant 0 : index
    %c0_0 = arith.constant 0 : index
    %0 = vector.load %arg1[%c0, %c0_0] : memref<64x128xf32, #tpu.memory_space<vmem>>, vector<64x128xf32>
    %1 = arith.truncf %0 : vector<64x128xf32> to vector<64x128xbf16>
    %c0_1 = arith.constant 0 : index
    %c0_2 = arith.constant 0 : index
    %2 = vector.load %arg2[%c0_1, %c0_2] : memref<128x128xbf16, #tpu.memory_space<vmem>>, vector<128x128xbf16>
    %cst = arith.constant dense<0.000000e+00> : vector<64x128xf32>
    %3 = tpu.matmul %1, %2, %cst {dimension_numbers = #tpu.dot_dimension_numbers<[1], [0], [0], [1], [0, 0, 1, 1], [], []>} : vector<64x128xbf16>, vector<128x128xbf16>, vector<64x128xf32> -> vector<64x128xf32>
    %c0_3 = arith.constant 0 : index
    %c0_4 = arith.constant 0 : index
    %4 = vector.load %arg3[%c0_3, %c0_4] : memref<64x128xf32, #tpu.memory_space<vmem>>, vector<64x128xf32>
    %c0_5 = arith.constant 0 : index
    %c0_6 = arith.constant 0 : index
    %5 = vector.load %arg4[%c0_5, %c0_6] : memref<1x128xf32, #tpu.memory_space<vmem>>, vector<1x128xf32>
    %6 = vector.broadcast %5 : vector<1x128xf32> to vector<64x128xf32>
    %7 = arith.mulf %3, %6 : vector<64x128xf32>
    %cst_7 = arith.constant dense<0.000000e+00> : vector<64xf32>
    %8 = vector.multi_reduction <add>, %7, %cst_7 [1] : vector<64x128xf32> to vector<64xf32>
    %9 = vector.shape_cast %8 : vector<64xf32> to vector<64x1xf32>
    %c0_8 = arith.constant 0 : index
    %c0_9 = arith.constant 0 : index
    %10 = vector.load %arg5[%c0_8, %c0_9] : memref<1x128xf32, #tpu.memory_space<vmem>>, vector<1x128xf32>
    %11 = vector.broadcast %10 : vector<1x128xf32> to vector<64x128xf32>
    %12 = arith.mulf %4, %11 : vector<64x128xf32>
    %cst_10 = arith.constant dense<0.000000e+00> : vector<64xf32>
    %13 = vector.multi_reduction <add>, %12, %cst_10 [1] : vector<64x128xf32> to vector<64xf32>
    %14 = vector.shape_cast %13 : vector<64xf32> to vector<64x1xf32>
    %15 = arith.addf %9, %14 : vector<64x1xf32>
    %c0_11 = arith.constant 0 : index
    %c0_12 = arith.constant 0 : index
    %16 = vector.load %arg6[%c0_11, %c0_12] : memref<1x128xf32, #tpu.memory_space<vmem>>, vector<1x128xf32>
    %17 = vector.broadcast %16 : vector<1x128xf32> to vector<64x128xf32>
    %18 = arith.mulf %3, %17 : vector<64x128xf32>
    %cst_13 = arith.constant dense<0.000000e+00> : vector<64xf32>
    %19 = vector.multi_reduction <add>, %18, %cst_13 [1] : vector<64x128xf32> to vector<64xf32>
    %20 = vector.shape_cast %19 : vector<64xf32> to vector<64x1xf32>
    %c0_14 = arith.constant 0 : index
    %c0_15 = arith.constant 0 : index
    %21 = vector.load %arg7[%c0_14, %c0_15] : memref<1x128xf32, #tpu.memory_space<vmem>>, vector<1x128xf32>
    %22 = vector.broadcast %21 : vector<1x128xf32> to vector<64x128xf32>
    %23 = arith.mulf %4, %22 : vector<64x128xf32>
    %cst_16 = arith.constant dense<0.000000e+00> : vector<64xf32>
    %24 = vector.multi_reduction <add>, %23, %cst_16 [1] : vector<64x128xf32> to vector<64xf32>
    %25 = vector.shape_cast %24 : vector<64xf32> to vector<64x1xf32>
    %26 = arith.addf %20, %25 : vector<64x1xf32>
    %27 = arith.truncf %3 : vector<64x128xf32> to vector<64x128xbf16>
    %c0_17 = arith.constant 0 : index
    %c0_18 = arith.constant 0 : index
    %28 = vector.load %arg8[%c0_17, %c0_18] : memref<64x128xbf16, #tpu.memory_space<vmem>>, vector<64x128xbf16>
    tpu.vector_store %arg8[%c0_17, %c0_18], %27 {strides = array<i32>} : memref<64x128xbf16, #tpu.memory_space<vmem>>, vector<64x128xbf16>,
    %c0_19 = arith.constant 0 : index
    %c0_20 = arith.constant 0 : index
    %29 = vector.load %arg9[%c0_19, %c0_20] : memref<64x1xf32, #tpu.memory_space<vmem>>, vector<64x1xf32>
    tpu.vector_store %arg9[%c0_19, %c0_20], %15 {strides = array<i32>} : memref<64x1xf32, #tpu.memory_space<vmem>>, vector<64x1xf32>,
    %c0_21 = arith.constant 0 : index
    %c0_22 = arith.constant 0 : index
    %30 = vector.load %arg10[%c0_21, %c0_22] : memref<64x1xf32, #tpu.memory_space<vmem>>, vector<64x1xf32>
    tpu.vector_store %arg10[%c0_21, %c0_22], %26 {strides = array<i32>} : memref<64x1xf32, #tpu.memory_space<vmem>>, vector<64x1xf32>,
    return
  }
  func.func @transform_0(%arg0: i32) -> (i32, i32) {
    %c0_i32 = arith.constant 0 : i32
    %c0_i32_0 = arith.constant 0 : i32
    return %arg0, %c0_i32 : i32, i32
  }
  func.func @transform_1(%arg0: i32) -> (i32, i32) {
    %c0_i32 = arith.constant 0 : i32
    %c0_i32_0 = arith.constant 0 : i32
    %c0_i32_1 = arith.constant 0 : i32
    return %c0_i32, %c0_i32_0 : i32, i32
  }
  func.func @transform_2(%arg0: i32) -> (i32, i32) {
    %c0_i32 = arith.constant 0 : i32
    %c0_i32_0 = arith.constant 0 : i32
    return %arg0, %c0_i32 : i32, i32
  }
  func.func @transform_3(%arg0: i32) -> (i32, i32) {
    %c0_i32 = arith.constant 0 : i32
    %c0_i32_0 = arith.constant 0 : i32
    %c0_i32_1 = arith.constant 0 : i32
    return %c0_i32, %c0_i32_0 : i32, i32
  }
  func.func @transform_4(%arg0: i32) -> (i32, i32) {
    %c0_i32 = arith.constant 0 : i32
    %c0_i32_0 = arith.constant 0 : i32
    %c0_i32_1 = arith.constant 0 : i32
    return %c0_i32, %c0_i32_0 : i32, i32
  }
  func.func @transform_5(%arg0: i32) -> (i32, i32) {
    %c0_i32 = arith.constant 0 : i32
    %c0_i32_0 = arith.constant 0 : i32
    %c0_i32_1 = arith.constant 0 : i32
    return %c0_i32, %c0_i32_0 : i32, i32
  }
  func.func @transform_6(%arg0: i32) -> (i32, i32) {
    %c0_i32 = arith.constant 0 : i32
    %c0_i32_0 = arith.constant 0 : i32
    %c0_i32_1 = arith.constant 0 : i32
    return %c0_i32, %c0_i32_0 : i32, i32
  }
  func.func @transform_7(%arg0: i32) -> (i32, i32) {
    %c0_i32 = arith.constant 0 : i32
    %c0_i32_0 = arith.constant 0 : i32
    return %arg0, %c0_i32 : i32, i32
  }
  func.func @transform_8(%arg0: i32) -> (i32, i32) {
    %c0_i32 = arith.constant 0 : i32
    %c0_i32_0 = arith.constant 0 : i32
    return %arg0, %c0_i32 : i32, i32
  }
  func.func @transform_9(%arg0: i32) -> (i32, i32) {
    %c0_i32 = arith.constant 0 : i32
    %c0_i32_0 = arith.constant 0 : i32
    return %arg0, %c0_i32 : i32, i32
  }
}

</mosaic_0001>

<bundles_post_ra>
// kernel: tpu_custom_call.1
= control target key start
LH: loop header
LB: loop body
LE: loop exit
PB: predicated region body
PF: predicated region fallthrough
CT: control target
= control target key end

     0   :  { %s1612_s0 = inlined_call_operand.hbm [shape: f32[256,128], index: 0, kind: input, shape index: {}]   ;;  %s1613_s1 = inlined_call_operand.hbm [shape: bf16[128,128], index: 1, kind: input, shape index: {}]   ;;  %s1614_s2 = inlined_call_operand.hbm [shape: f32[256,128], index: 2, kind: input, shape index: {}]   ;;  %s1615_s3 = inlined_call_operand.vmem [shape: f32[1,128], index: 3, kind: input, shape index: {}]   ;;  %s1616_s4 = inlined_call_operand.vmem [shape: f32[1,128], index: 4, kind: input, shape index: {}]   ;;  %s1617_s5 = inlined_call_operand.vmem [shape: f32[1,128], index: 5, kind: input, shape index: {}]   ;;  %s1618_s6 = inlined_call_operand.vmem [shape: f32[1,128], index: 6, kind: input, shape index: {}]   ;;  %s1619_s7 = inlined_call_operand.hbm [shape: bf16[256,128], index: 7, kind: output, shape index: {0}]   ;;  %s1620_s8 = inlined_call_operand.vmem [shape: f32[256,1], index: 8, kind: output, shape index: {1}]   ;;  %s1621_s9 = inlined_call_operand.vmem [shape: f32[256,1], index: 9, kind: output, shape index: {2}]  }
   0x1   :  { %1631 = sst [smem:[#allocation19_spill]] %s1612_s0 }
   0x2   :  { %1632 = sst [smem:[#allocation20_spill]] %s1613_s1 }
   0x3   :  { %15 = vsyncpa [#allocation3], 0 }
   0x4   :  { %17 = vsyncpa [#allocation3 + $0x1], 0 }
   0x5   :  { %18 = vsyncpa [#allocation6], 0 }
   0x6   :  { %19 = vsyncpa [#allocation4], 0 }
   0x7   :  { %21 = vsyncpa [#allocation4 + $0x1], 0  ;;  %s1309_s30 = smov 0   ;;  %s1311_s10 = smov 0  }
   0x8   :  { %s1313_s11 = smov 0   ;;  %s1315_s12 = smov 0  }
   0x9 LB: > { %1633 = sst [smem:[#allocation13_spill]] %s1238_s30  ;;  %s1330_s13 = sadd.s32 1, %s1250_s12   ;;  %s1250_s12 = sphi %s1315_s12, %s1654_s12   ;;  %s1246_s11 = sphi %s1313_s11, %s1656_s11   ;;  %s1242_s10 = sphi %s1311_s10, %s1658_s10   ;;  %s1238_s30 = sphi %s1309_s30, %s1657_s30  }
   0xa   : > { %1634 = sst [smem:[#allocation14_spill]] %s1246_s11  ;;  %s34_s14 = sadd.s32 1, %s1246_s11 }
   0xb   : > { %1635 = sst [smem:[#allocation15_spill]] %s1250_s12  ;;  %s31_s15 = ssub.s32 %s1250_s12, %s1330_s13 }
   0xc   : > { %1636 = sst [smem:[#allocation16_spill]] %s1330_s13  ;;  %p41_p0 = scmp.ne.s32.totalorder %s1246_s11, %s1242_s10 }
   0xd   : > { %p32_p1 = scmp.eq.s32.totalorder %s31_s15, 0  ;;  %p42_p2 = scmp.eq.s32.totalorder %s1250_s12, 0 }
   0xe   : > { %p1040_p3 = scmp.lt.s32.totalorder %s1250_s12, 4  ;;  %s306_s17 = sand.u32 1, %s1250_s12  }
   0xf   : > { %s1340_s16 = scalar_select %p32_p1, %s1246_s11, %s34_s14  }
  0x10   : > { %p43_p4 = por %p42_p2, %p41_p0  ;;  %s308_s18 = sand.u32 1, %s1246_s11  }
  0x11   : > { %1637 = sst [smem:[#allocation17_spill]] %s1340_s16  ;;  %s1347_s19 = sshll.u32 %s308_s18, 6 }
  0x12   : > { %s956_s20 = sshll.u32 %s1250_s12, 6  ;;  %s1638_s0 = sld [smem:[#allocation19_spill]] }
  0x13   : > { %s310_s25 = scalar_lea.vmem [#allocation2], %s1347_s19  ;;  %p1356_p5 = pnand %p1040_p3, %p43_p4 }
  0x14   : > { %s318_s26 = sshll.u32 %s310_s25, 4  ;;  %s1363_s14 = scalar_lea.hbm %s1614_s2, %s956_s20  ;;  %s319_s26 = int_to_ptr.vmem [resolvable:$true] %s318_s26 }
  0x15   : > { %s1365_s15 = scalar_lea.sflag [#allocation3], %s306_s17  ;;  %p1090_p7 = pneg %p1356_p5 }
  0x18   : > { %s315_s23 = scalar_lea.hbm %s1638_s0, %s956_s20  ;;  %s1093_s25 = scalar_lea.hbm %s1638_s0, 256 }
  0x19   : > { %s316_s24 = sshll.u32 %s315_s23, 4  ;;  %s317_s24 = int_to_ptr.hbm [resolvable:$true] %s316_s24 }
  0x1a   : > { %s1086_s18 = sshra.s32 %s317_s24, 4  ;;  %s1087_s18 = int_to_ptr.hbm [resolvable:$true] %s1086_s18 }
  0x1b   : > { %s1088_s21 = scalar_lea.hbm %s1087_s18, 64  ;;  %p1094_p10 = scmp.lt.s32.totalorder %s1087_s18, %s1638_s0 }
  0x1c   : > { %p1089_p6 = scmp.ne.s32.totalorder %s1087_s18, %s1088_s21  ;;  %p1095_p11 = scmp.lt.s32.totalorder %s1093_s25, %s1088_s21 }
  0x1e   : > { %p1091_p8 = pnand %p1090_p7, %p1089_p6  ;;  %p1096_p12 = por %p1095_p11, %p1094_p10 }
  0x20   : > { %p1092_p9 = pneg %p1091_p8 }
  0x22   : > { %p1097_p13 = pnand %p1096_p12, %p1092_p9 }
  0x24   : > { %1100 = shalt.err (!%p1097_p13)
}
  0x25   : > { %s1622_s17 = smov 128   ;;  %s1623_s20 = smov 8  }
  0x26   : > { %1031 = dma.hbm_to_vmem [thread:$0]  (!%p1356_p5), %s317_s24, 1024, %s319_s26, %s1365_s15, %s1622_s17, %s1622_s17, %s1623_s20  }
  0x27   : > { %s338_s18 = sshll.u32 %s1363_s14, 4  ;;  %s332_s21 = scalar_lea.vmem [#allocation7], %s1347_s19  ;;  %s339_s18 = int_to_ptr.hbm [resolvable:$true] %s338_s18 }
  0x28   : > { %s1386_s22 = sshll.u32 %s332_s21, 4  ;;  %s1389_s23 = sadd.s32 4294967295, %s1250_s12   ;;  %s341_s22 = int_to_ptr.vmem [resolvable:$true] %s1386_s22 }
  0x29   : > { %s900_s25 = sadd.s32 4294967294, %s1250_s12   ;;  %p47_p1 = scmp.ne.s32.totalorder %s1242_s10, %s1238_s30 }
  0x2a   : > { %p1625_p2 = scmp.eq.s32.totalorder %s1389_s23, 0  ;;  %p202_p3 = scmp.eq.s32.totalorder %s1389_s23, 3 }
  0x2b   : > { %p208_p4 = scmp.eq.s32.totalorder %s900_s25, 3  ;;  %p901_p8 = scmp.ge.s32.totalorder %s1250_s12, 1 }
  0x2c   : > { %p1398_p6 = por %p1625_p2, %p47_p1  ;;  %p1406_p9 = por %p202_p3, %p41_p0 }
  0x2d   : > { %p1410_p10 = por %p208_p4, %p47_p1  ;;  %p267_p11 = scmp.lt.s32.totalorder %s1250_s12, 5 }
  0x2e   : > { %s1644_s1 = sld [smem:[#allocation20_spill]]  ;;  %s1254_s25 = smov [#allocation5]  }
  0x2f   : > { %s1642_s24 = scalar_select %p1410_p10, 1, 0 }
  0x30   : > { %p1418_p12 = pnand %p901_p8, %p267_p11  ;;  %s280_s17 = sshll.u32 %s1254_s25, 4  ;;  %s281_s17 = int_to_ptr.vmem [resolvable:$true] %s280_s17 }
  0x31   : > { %1643 = sst [smem:[#allocation18_spill]] %s1642_s24  ;;  %s1116_s26 = sshra.s32 %s339_s18, 4  ;;  %s1117_s26 = int_to_ptr.hbm [resolvable:$true] %s1116_s26 }
  0x32   : > { %p1024_p0 = pneg %p1418_p12  ;;  %s1118_s14 = scalar_lea.hbm %s1117_s26, 64 }
  0x33   : > { %p1119_p1 = scmp.ne.s32.totalorder %s1117_s26, %s1118_s14  ;;  %s1123_s25 = scalar_lea.hbm %s1614_s2, 256 }
  0x34   : > { %s278_s29 = sshll.u32 %s1644_s1, 4  ;;  %p1427_p13 = pnand %p1024_p0, %p1625_p2  ;;  %s279_s29 = int_to_ptr.hbm [resolvable:$true] %s278_s29 }
  0x35   : > { %p1121_p3 = pnand %p1119_p1, %p1090_p7  ;;  %p1124_p8 = scmp.lt.s32.totalorder %s1117_s26, %s1614_s2 }
  0x36   : > { %p1125_p11 = scmp.lt.s32.totalorder %s1123_s25, %s1118_s14 }
  0x37   : > { %p1122_p4 = pneg %p1121_p3 }
  0x38   : > { %p1126_p0 = por %p1125_p11, %p1124_p8 }
  0x3a   : > { %p1127_p2 = pnand %p1126_p0, %p1122_p4 }
  0x3c   : > { %1130 = shalt.err (!%p1127_p2)
}
  0x3d   : > { %s1647_s13 = smov 8   ;;  %s1648_s24 = smov 128  }
  0x3e   : > { %1034 = dma.hbm_to_vmem [thread:$0]  (!%p1356_p5), %s339_s18, 1024, %s341_s22, %s1365_s15, %s1648_s24, %s1648_s24, %s1647_s13  }
  0x3f   : > { %s1255_s30 = smov 64   ;;  %s1256_s12 = smov 4  }
  0x40   : > { %1027 = dma.hbm_to_vmem [thread:$0]  (!%p1427_p13), %s279_s29, 1024, %s281_s17, [#allocation6], %s1255_s30, %s1255_s30, %s1256_s12  }
  0x41   : > { %352 = sbr.rel (%p1418_p12) target bundleno = 404 (0x194), region = 48  ;;  %s354_s0 = sand.u32 (!%p1418_p12), 1, %s1389_s23  }
  0x42   : > { %s1452_s1 = sand.u32 (!%p1418_p12), 1, %s1242_s10   ;;  %s355_s16 = scalar_lea.sflag (!%p1418_p12), [#allocation3], %s354_s0 }
  0x43   : > { %s911_s11 = sshll.u32 (!%p1418_p12), %s1452_s1, 6 }
  0x44   : > { %s1455_s27 = scalar_lea.vmem (!%p1418_p12), [#allocation2], %s911_s11 }
  0x46   : > { %1221 = dma.done.wait (%p1398_p6), %s355_s16, 1024  }
  0x47   : > { %1223 = vsyncadd (%p1398_p6), %s355_s16, 4294966272  ;;  %p1649_p5 = scmp.eq.s32.totalorder %s1389_s23, 0 }
  0x49   : > { %1225 = dma.done.wait (%p1649_p5), [#allocation6], 1024   ;;  %p1650_p7 = pmov %p1649_p5 }
  0x4a   : > { %s1465_s30 = scalar_lea.vmem [#allocation7], %s911_s11 }
  0x4b   : > { %1227 = vsyncadd (%p1650_p7), [#allocation6], 4294966272 }
  0x4c   : > { %1229 = dma.done.wait (%p1398_p6), %s355_s16, 1024  }
  0x4d   : > { %1231 = vsyncadd (%p1398_p6), %s355_s16, 4294966272  ;;  %v965_v0 = vld [vmem:[#allocation5 + $0x38] sm:$0xff]  ;;  %v964_v1 = vld [vmem:[#allocation5 + $0x30] sm:$0xff]  ;;  %s914_s22 = sshll.u32 %s1452_s1, 5  ;;  %s966_s26 = sshll.u32 %s1389_s23, 5 }
  0x4e   : > { %515 = vmatpush.bf16.msra.mxu0 %v965_v0  ;;  %990 = vmatpush.bf16.msra.mxu1 %v965_v0  ;;  %v545_v2 = vld [vmem:[%s1465_s30 + $0x8] sm:$0xff]  ;;  %v1082_v4 = vld [vmem:[%s1616_s4] ss:$0 sm:$0xff]  ;;  %v1476_v5 = vld [vmem:[%s1465_s30 + $0x10] sm:$0xff]  ;;  %s1524_s29 = scalar_lea.vmem [#allocation8], %s914_s22  ;;  %s735_s0 = scalar_lea.hbm %s1619_s7, %s966_s26 }
  0x4f   : > { %991 = vmatpush.bf16.msra.mxu2 %v965_v0  ;;  %992 = vmatpush.bf16.msra.mxu3 %v965_v0  ;;  %v963_v3 = vld [vmem:[#allocation5 + $0x28] sm:$0xff]  ;;  %v1479_v6 = vld [vmem:[%s1465_s30] sm:$0xff]  ;;  %v585_v7 = vmul.f32 %v1082_v4, %v545_v2  ;;  %v586_v8 = vmul.f32 %v1082_v4, %v1476_v5  ;;  %v961_v13 = vld [vmem:[#allocation5 + $0x18] sm:$0xff]  ;;  %s736_s21 = sshll.u32 %s1524_s29, 4  ;;  %s738_s11 = sshll.u32 %s735_s0, 4  ;;  %s737_s21 = int_to_ptr.vmem [resolvable:$true] %s736_s21  ;;  %s739_s11 = int_to_ptr.hbm [resolvable:$true] %s738_s11 }
  0x50   : > { %v584_v9 = vmul.f32 %v1082_v4, %v1479_v6  ;;  %v962_v10 = vld [vmem:[#allocation5 + $0x20] sm:$0xff]  ;;  %v1485_v12 = vld [vmem:[%s1465_s30 + $0x28] sm:$0xff]  ;;  %v547_v14 = vld [vmem:[%s1465_s30 + $0x18] sm:$0xff]  ;;  %s714_s16 = scalar_lea.sflag [#allocation4], %s1452_s1  ;;  %s1196_s15 = scalar_lea.hbm %s1619_s7, 128 }
  0x51   : > { %594 = vadd.xlane.f32.xlu0 %v585_v7  ;;  %596 = vadd.xlane.f32.xlu1 %v586_v8  ;;  %v548_v11 = vld [vmem:[%s1465_s30 + $0x20] sm:$0xff]  ;;  %v589_v16 = vmul.f32 %v1082_v4, %v1485_v12  ;;  %v587_v17 = vmul.f32 %v1082_v4, %v547_v14  ;;  %v960_v18 = vld [vmem:[#allocation5 + $0x10] sm:$0xff]  ;;  %v1495_v20 = vld [vmem:[%s1465_s30 + $0x38] sm:$0xff] }
  0x52   : > { %516 = vmatpush.bf16.msra.mxu0 %v964_v1  ;;  %993 = vmatpush.bf16.msra.mxu1 %v964_v1  ;;  %v588_v15 = vmul.f32 %v1082_v4, %v548_v11  ;;  %v1492_v19 = vld [vmem:[%s1618_s6] ss:$0 sm:$0xff]  ;;  %v959_v21 = vld [vmem:[#allocation5 + $0x8] sm:$0xff]  ;;  %v1498_v22 = vld [vmem:[%s1465_s30 + $0x30] sm:$0xff]  ;;  %v591_v23 = vmul.f32 %v1082_v4, %v1495_v20 }
  0x53   : > { %994 = vmatpush.bf16.msra.mxu2 %v964_v1  ;;  %995 = vmatpush.bf16.msra.mxu3 %v964_v1  ;;  %v649_v24 = vmul.f32 %v1492_v19, %v545_v2  ;;  %v958_v25 = vld [vmem:[#allocation5] sm:$0xff]  ;;  %v440_v27 = vld [vmem:[%s1455_s27 + $0x8] sm:$0xff]  ;;  %v590_v28 = vmul.f32 %v1082_v4, %v1498_v22  ;;  %v441_v29 = vld [vmem:[%s1455_s27 + $0x10] sm:$0xff]  ;;  %v648_v39 = vmul.f32 %v1492_v19, %v1479_v6 }
  0x54   : > { %592 = vadd.xlane.f32.xlu2 %v584_v9  ;;  %v439_v26 = vld [vmem:[%s1455_s27] sm:$0xff]  ;;  %v442_v30 = vld [vmem:[%s1455_s27 + $0x18] sm:$0xff]  ;;  %v444_v32 = vld [vmem:[%s1455_s27 + $0x28] sm:$0xff]  ;;  %v652_v40 = vmul.f32 %v1492_v19, %v548_v11  ;;  %v651_v41 = vmul.f32 %v1492_v19, %v547_v14  ;;  %v650_v42 = vmul.f32 %v1492_v19, %v1476_v5  ;;  %v654_v7 = vmul.f32 %v1492_v19, %v1498_v22 }
  0x55   : > { %v443_v31 = vld [vmem:[%s1455_s27 + $0x20] sm:$0xff]  ;;  %v445_v33 = vld [vmem:[%s1455_s27 + $0x30] sm:$0xff]  ;;  %v446_v34 = vld [vmem:[%s1455_s27 + $0x38] sm:$0xff]  ;;  %v447_v35 = vpack.c.bf16 %v440_v27, %v439_v26  ;;  %v448_v36 = vpack.c.bf16 %v442_v30, %v441_v29  ;;  %s1190_s27 = sshra.s32 %s739_s11, 4  ;;  %s1191_s27 = int_to_ptr.hbm [resolvable:$true] %s1190_s27 }
  0x56   : > { %517 = vmatpush.bf16.msra.mxu0 %v963_v3  ;;  %996 = vmatpush.bf16.msra.mxu1 %v963_v3  ;;  %v449_v37 = vpack.c.bf16 %v444_v32, %v443_v31  ;;  %v450_v38 = vpack.c.bf16 %v446_v34, %v445_v33  ;;  %v1084_v43 = vld [vmem:[%s1615_s3] ss:$0 sm:$0xff]  ;;  %s1192_s30 = scalar_lea.hbm %s1191_s27, 32  ;;  %p1197_p13 = scmp.lt.s32.totalorder %s1191_s27, %s1619_s7 }
  0x57   : > { %997 = vmatpush.bf16.msra.mxu2 %v963_v3  ;;  %998 = vmatpush.bf16.msra.mxu3 %v963_v3  ;;  %v1085_v48 = vld [vmem:[%s1617_s5] ss:$0 sm:$0xff]  ;;  %p1193_p2 = scmp.ne.s32.totalorder %s1191_s27, %s1192_s30  ;;  %p1198_p1 = scmp.lt.s32.totalorder %s1196_s15, %s1192_s30 }
  0x59   : > { %600 = vadd.xlane.f32.xlu0 %v588_v15  ;;  %602 = vadd.xlane.f32.xlu1 %v589_v16  ;;  %p1194_p6 = pnand %p1193_p2, %p1406_p9  ;;  %p1199_p3 = por %p1198_p1, %p1197_p13 }
  0x5a   : > { %518 = vmatpush.bf16.msra.mxu0 %v962_v10  ;;  %999 = vmatpush.bf16.msra.mxu1 %v962_v10 }
  0x5b   : > { %1000 = vmatpush.bf16.msra.mxu2 %v962_v10  ;;  %1001 = vmatpush.bf16.msra.mxu3 %v962_v10  ;;  %p1195_p12 = pneg %p1194_p6 }
  0x5c   : > { %598 = vadd.xlane.f32.xlu2 %v587_v17 }
  0x5d   : > { %p1200_p4 = pnand %p1199_p3, %p1195_p12 }
  0x5e   : > { %519 = vmatpush.bf16.msra.mxu0 %v961_v13  ;;  %1002 = vmatpush.bf16.msra.mxu1 %v961_v13 }
  0x5f   : > { %1003 = vmatpush.bf16.msra.mxu2 %v961_v13  ;;  %1004 = vmatpush.bf16.msra.mxu3 %v961_v13 }
  0x61   : > { %606 = vadd.xlane.f32.xlu0 %v591_v23  ;;  %658 = vadd.xlane.f32.xlu1 %v649_v24 }
  0x62   : > { %520 = vmatpush.bf16.msra.mxu0 %v960_v18  ;;  %1005 = vmatpush.bf16.msra.mxu1 %v960_v18 }
  0x63   : > { %1006 = vmatpush.bf16.msra.mxu2 %v960_v18  ;;  %1007 = vmatpush.bf16.msra.mxu3 %v960_v18 }
  0x64   : > { %604 = vadd.xlane.f32.xlu2 %v590_v28 }
  0x66   : > { %521 = vmatpush.bf16.msra.mxu0 %v959_v21  ;;  %1008 = vmatpush.bf16.msra.mxu1 %v959_v21 }
  0x67   : > { %1009 = vmatpush.bf16.msra.mxu2 %v959_v21  ;;  %1010 = vmatpush.bf16.msra.mxu3 %v959_v21 }
  0x69   : > { %656 = vadd.xlane.f32.xlu0 %v648_v39  ;;  %664 = vadd.xlane.f32.xlu1 %v652_v40 }
  0x6a   : > { %522 = vmatpush.bf16.msra.mxu0 %v958_v25  ;;  %1011 = vmatpush.bf16.msra.mxu1 %v958_v25 }
  0x6b   : > { %1012 = vmatpush.bf16.msra.mxu2 %v958_v25  ;;  %1013 = vmatpush.bf16.msra.mxu3 %v958_v25 }
  0x6c   : > { %660 = vadd.xlane.f32.xlu2 %v650_v42 }
  0x6d   : > { %523 = vmatmul.bf16.vlgmr.msra.gmra.mxu0 %v447_v35  ;;  %528 = vmatmul.bf16.vlgmr.msra.gmra.mxu1 %v448_v36 }
  0x6e   : > { %533 = vmatmul.bf16.vlgmr.msra.gmra.mxu2 %v449_v37  ;;  %538 = vmatmul.bf16.vlgmr.msra.gmra.mxu3 %v450_v38 }
  0x71   : > { %662 = vadd.xlane.f32.xlu0 %v651_v41 }
  0xea   : > { %v524_v44 = vpop.f32.mrf.mxu0  ;;  %v529_v45 = vpop.f32.mrf.mxu1 }
  0xeb   : > { %v558_v46 = vmul.f32 %v1084_v43, %v529_v45  ;;  %v556_v47 = vmul.f32 %v1084_v43, %v524_v44  ;;  %v620_v51 = vmul.f32 %v1085_v48, %v524_v44  ;;  %v622_v57 = vmul.f32 %v1085_v48, %v529_v45 }
  0xed   : > { %568 = vadd.xlane.f32.xlu1 %v558_v46  ;;  %564 = vadd.xlane.f32.xlu0 %v556_v47 }
  0xf1   : > { %v534_v49 = vpop.f32.mrf.mxu2  ;;  %v539_v50 = vpop.f32.mrf.mxu3 }
  0xf2   : > { %v526_v52 = vpop.f32.mrf.mxu0  ;;  %v531_v53 = vpop.f32.mrf.mxu1  ;;  %v560_v54 = vmul.f32 %v1084_v43, %v534_v49  ;;  %v626_v60 = vmul.f32 %v1085_v48, %v539_v50  ;;  %v562_v61 = vmul.f32 %v1084_v43, %v539_v50  ;;  %v624_v0 = vmul.f32 %v1085_v48, %v534_v49 }
  0xf3   : > { %v970_v55 = vpack.c.bf16 %v526_v52, %v524_v44  ;;  %v975_v56 = vpack.c.bf16 %v531_v53, %v529_v45  ;;  %v621_v1 = vmul.f32 %v1085_v48, %v526_v52  ;;  %v559_v2 = vmul.f32 %v1084_v43, %v531_v53 }
  0xf4   : > { %572 = vadd.xlane.f32.xlu2 %v560_v54  ;;  %v557_v3 = vmul.f32 %v1084_v43, %v526_v52  ;;  %v623_v5 = vmul.f32 %v1085_v48, %v531_v53 }
  0xf5   : > { %971 = vst [vmem:[%s1524_s29] sm:$0xff] %v970_v55   ;;  %628 = vadd.xlane.f32.xlu1 %v620_v51  ;;  %632 = vadd.xlane.f32.xlu0 %v622_v57 }
  0xf6   : > { %987 = vst [vmem:[%s1524_s29 + $0x8] sm:$0xff] %v975_v56  }
  0xf9   : > { %v536_v58 = vpop.f32.mrf.mxu2  ;;  %v541_v59 = vpop.f32.mrf.mxu3 }
  0xfa   : > { %v980_v62 = vpack.c.bf16 %v536_v58, %v534_v49  ;;  %v985_v63 = vpack.c.bf16 %v541_v59, %v539_v50  ;;  %v561_v4 = vmul.f32 %v1084_v43, %v536_v58  ;;  %v625_v6 = vmul.f32 %v1085_v48, %v536_v58 }
  0xfb   : > { %v627_v8 = vmul.f32 %v1085_v48, %v541_v59  ;;  %v563_v9 = vmul.f32 %v1084_v43, %v541_v59 }
  0xfc   : > { %988 = vst [vmem:[%s1524_s29 + $0x10] sm:$0xff] %v980_v62   ;;  %636 = vadd.xlane.f32.xlu2 %v624_v0 }
  0xfd   : > { %989 = vst [vmem:[%s1524_s29 + $0x18] sm:$0xff] %v985_v63   ;;  %640 = vadd.xlane.f32.xlu1 %v626_v60  ;;  %576 = vadd.xlane.f32.xlu0 %v562_v61 }
 0x104   : > { %630 = vadd.xlane.f32.xlu2 %v621_v1 }
 0x105   : > { %570 = vadd.xlane.f32.xlu1 %v559_v2  ;;  %566 = vadd.xlane.f32.xlu0 %v557_v3 }
 0x10c   : > { %574 = vadd.xlane.f32.xlu2 %v561_v4 }
 0x10d   : > { %634 = vadd.xlane.f32.xlu1 %v623_v5  ;;  %638 = vadd.xlane.f32.xlu0 %v625_v6 }
 0x114   : > { %642 = vadd.xlane.f32.xlu2 %v627_v8 }
 0x115   : > { %578 = vadd.xlane.f32.xlu1 %v563_v9  ;;  %668 = vadd.xlane.f32.xlu0 %v654_v7 }
 0x116   : > { %1203 = shalt.err (!%p1200_p4)
}
 0x117   : > { %s1257_s1 = smov 64   ;;  %s1258_s18 = smov 4   ;;  %v653_v10 = vmul.f32 %v1492_v19, %v1485_v12  ;;  %v655_v11 = vmul.f32 %v1492_v19, %v1495_v20  ;;  %v595_v13 = vpop.xlane.xlu0 %594  ;;  %v597_v14 = vpop.xlane.xlu1 %596  ;;  %vm696_vm0 = vcmask 7168  }
 0x118   : > { %1022 = dma.vmem_to_hbm [thread:$0]  (%p1406_p9), %s737_s21, 512, %s739_s11, %s714_s16, %s1257_s1, %s1257_s1, %s1258_s18   ;;  %v593_v16 = vpop.xlane.xlu2 %592 }
 0x119   : > { %s915_s22 = sshll.u32 %s1389_s23, 3 }
 0x11a   : > { %p428_p9 = scmp.lt.s32.totalorder %s915_s22, 31 }
 0x11c   : > { %666 = vadd.xlane.f32.xlu2 %v653_v10  ;;  %s1660_s22 = smov (!%p428_p9, %s915_s22), 31 }
 0x11d   : > { %670 = vadd.xlane.f32.xlu1 %v655_v11  ;;  %s916_s19 = sshll.u32 %s1660_s22, 3 }
 0x11e   : > { %s1556_s29 = scalar_lea.vmem %s1620_s8, %s916_s19  ;;  %s1565_s26 = scalar_lea.vmem %s1621_s9, %s916_s19 }
 0x11f   : > { %v601_v15 = vpop.xlane.xlu0 %600  ;;  %v603_v17 = vpop.xlane.xlu1 %602 }
 0x120   : > { %v599_v21 = vpop.xlane.xlu2 %598 }
 0x127   : > { %v607_v18 = vpop.xlane.xlu0 %606  ;;  %v659_v22 = vpop.xlane.xlu1 %658 }
 0x128   : > { %v605_v24 = vpop.xlane.xlu2 %604 }
 0x12f   : > { %v657_v23 = vpop.xlane.xlu0 %656  ;;  %v665_v25 = vpop.xlane.xlu1 %664 }
 0x130   : > { %v661_v12 = vpop.xlane.xlu2 %660 }
 0x137   : > { %v663_v26 = vpop.xlane.xlu0 %662 }
 0x160   : > { %v569_v19 = vpop.xlane.xlu1 %568  ;;  %v565_v20 = vpop.xlane.xlu0 %564 }
 0x161   : > { %v610_v27 = vadd.f32 %v597_v14, %v569_v19  ;;  %v608_v28 = vadd.f32 %v593_v16, %v565_v20 }
 0x163   : > { %699 = vst.msk [vmem:[%s1556_s29 + $0x10] sm:$0xff] %vm696_vm0, %v610_v27 }
 0x164   : > { %697 = vst.msk [vmem:[%s1556_s29] sm:$0xff] %vm696_vm0, %v608_v28 }
 0x167   : > { %v573_v29 = vpop.xlane.xlu2 %572 }
 0x168   : > { %v612_v30 = vadd.f32 %v601_v15, %v573_v29  ;;  %v629_v31 = vpop.xlane.xlu1 %628  ;;  %v633_v32 = vpop.xlane.xlu0 %632 }
 0x169   : > { %v672_v33 = vadd.f32 %v657_v23, %v629_v31  ;;  %v674_v34 = vadd.f32 %v661_v12, %v633_v32 }
 0x16a   : > { %701 = vst.msk [vmem:[%s1556_s29 + $0x20] sm:$0xff] %vm696_vm0, %v612_v30 }
 0x16b   : > { %705 = vst.msk [vmem:[%s1565_s26] sm:$0xff] %vm696_vm0, %v672_v33 }
 0x16c   : > { %707 = vst.msk [vmem:[%s1565_s26 + $0x10] sm:$0xff] %vm696_vm0, %v674_v34 }
 0x16f   : > { %v637_v35 = vpop.xlane.xlu2 %636 }
 0x170   : > { %v676_v36 = vadd.f32 %v665_v25, %v637_v35  ;;  %v641_v37 = vpop.xlane.xlu1 %640  ;;  %v577_v38 = vpop.xlane.xlu0 %576 }
 0x171   : > { %v614_v39 = vadd.f32 %v605_v24, %v577_v38 }
 0x172   : > { %709 = vst.msk [vmem:[%s1565_s26 + $0x20] sm:$0xff] %vm696_vm0, %v676_v36 }
 0x173   : > { %703 = vst.msk [vmem:[%s1556_s29 + $0x30] sm:$0xff] %vm696_vm0, %v614_v39 }
 0x177   : > { %v631_v40 = vpop.xlane.xlu2 %630 }
 0x178   : > { %v673_v41 = vadd.f32 %v659_v22, %v631_v40  ;;  %v571_v42 = vpop.xlane.xlu1 %570  ;;  %v567_v43 = vpop.xlane.xlu0 %566 }
 0x179   : > { %v611_v44 = vadd.f32 %v599_v21, %v571_v42  ;;  %v609_v45 = vadd.f32 %v595_v13, %v567_v43 }
 0x17a   : > { %706 = vst.msk [vmem:[%s1565_s26 + $0x8] sm:$0xff] %vm696_vm0, %v673_v41 }
 0x17b   : > { %700 = vst.msk [vmem:[%s1556_s29 + $0x18] sm:$0xff] %vm696_vm0, %v611_v44 }
 0x17c   : > { %698 = vst.msk [vmem:[%s1556_s29 + $0x8] sm:$0xff] %vm696_vm0, %v609_v45 }
 0x17f   : > { %v575_v46 = vpop.xlane.xlu2 %574 }
 0x180   : > { %v613_v47 = vadd.f32 %v603_v17, %v575_v46  ;;  %v635_v48 = vpop.xlane.xlu1 %634  ;;  %v639_v49 = vpop.xlane.xlu0 %638 }
 0x181   : > { %v675_v50 = vadd.f32 %v663_v26, %v635_v48 }
 0x182   : > { %702 = vst.msk [vmem:[%s1556_s29 + $0x28] sm:$0xff] %vm696_vm0, %v613_v47 }
 0x183   : > { %708 = vst.msk [vmem:[%s1565_s26 + $0x18] sm:$0xff] %vm696_vm0, %v675_v50 }
 0x187   : > { %v643_v51 = vpop.xlane.xlu2 %642 }
 0x188   : > { %v579_v52 = vpop.xlane.xlu1 %578  ;;  %v669_v53 = vpop.xlane.xlu0 %668 }
 0x189   : > { %v615_v54 = vadd.f32 %v607_v18, %v579_v52  ;;  %v678_v55 = vadd.f32 %v669_v53, %v641_v37 }
 0x18b   : > { %704 = vst.msk [vmem:[%s1556_s29 + $0x38] sm:$0xff] %vm696_vm0, %v615_v54 }
 0x18c   : > { %711 = vst.msk [vmem:[%s1565_s26 + $0x30] sm:$0xff] %vm696_vm0, %v678_v55 }
 0x18f   : > { %v667_v56 = vpop.xlane.xlu2 %666 }
 0x190   : > { %v677_v57 = vadd.f32 %v667_v56, %v639_v49  ;;  %v671_v58 = vpop.xlane.xlu1 %670 }
 0x191   : > { %v679_v59 = vadd.f32 %v671_v58, %v643_v51 }
 0x192   : > { %710 = vst.msk [vmem:[%s1565_s26 + $0x28] sm:$0xff] %vm696_vm0, %v677_v57 }
 0x193   : > { %712 = vst.msk [vmem:[%s1565_s26 + $0x38] sm:$0xff] %vm696_vm0, %v679_v59 }
 0x194 PF: > { %s1651_s14 = sld [smem:[#allocation15_spill]] }
 0x195   : > { %s1652_s25 = sld [smem:[#allocation13_spill]] }
 0x19a   : > { %p1042_p8 = scmp.ge.s32.totalorder %s1651_s14, 2 }
 0x19b   : > { %s761_s11 = sand.u32 1, %s1652_s25  }
 0x19c   : > { %p1036_p11 = pnand %p1042_p8, %p1410_p10  ;;  %s762_s16 = scalar_lea.sflag [#allocation4], %s761_s11 }
 0x19e   : > { %p1037_p0 = pneg %p1036_p11 }
 0x1a0   : > { %1233 = dma.done.wait (%p1037_p0), %s762_s16, 512  }
 0x1a1   : > { %1235 = vsyncadd (%p1037_p0), %s762_s16, 4294966784  ;;  %s1654_s12 = sld [smem:[#allocation16_spill]]  ;;  %s1657_s30 = smov %s1242_s10 }
 0x1a2   : > { %s1655_s27 = sld [smem:[#allocation14_spill]] }
 0x1a3   : > { %s1656_s11 = sld [smem:[#allocation17_spill]] }
 0x1a7   : > { %p24_p5 = scmp.ge.s32.totalorder %s1654_s12, 6  }
 0x1a8   : > { %s1658_s10 = smov %s1655_s27 }
 0x1a9   :  { %26 = sbr.rel (!%p24_p5) target bundleno = 9 (0x9), region = 132 }
 0x1ae   :  { %784 = vsyncpa [#allocation3], 1 }
 0x1af   :  { %786 = vsyncpa [#allocation3 + $0x1], 1 }
 0x1b0   :  { %787 = vsyncpa [#allocation6], 1 }
 0x1b1   :  { %788 = vsyncpa [#allocation4], 1 }
 0x1b2   :  { %790 = vsyncpa [#allocation4 + $0x1], 1 }

</bundles_post_ra>
